<compile_context>
chip_gen: v6e
topology: v6e:2x2x1
jax: 0.10.0
libtpu: 0.0.40
codegen_flags: <defaults>
</compile_context>

<pallas_src>
import functools

import jax
import jax.numpy as jnp
from jax import lax
from jax.experimental import pallas as pl
from jax.experimental.pallas import tpu as pltpu


def _ca_kernel(x_ref, w1_ref, b1_ref, w2_ref, b2_ref, o_ref, *, true_hw, padded):
    # x_ref: (C, HWp) slab for the current batch element, native dtype.
    x = x_ref[...]
    C, HWp = x.shape

    # ---- adaptive avg/max pool to 1x1 (reduce over the lane/spatial axis) ----
    # f32 accumulation without materializing a full-slab f32 copy.
    ssum = jnp.sum(x, axis=-1, keepdims=True, dtype=jnp.float32)          # (C, 1)
    avg = ssum * (1.0 / float(true_hw))                                   # true divisor
    if padded:
        lane = lax.broadcasted_iota(jnp.int32, (C, HWp), 1)
        x_for_max = jnp.where(lane < true_hw, x, jnp.array(-jnp.inf, x.dtype))
    else:
        x_for_max = x
    mx = jnp.max(x_for_max, axis=-1, keepdims=True).astype(jnp.float32)   # (C, 1)

    # ---- fused shared MLP: one pass over weights for [avg | max] ----
    col = lax.broadcasted_iota(jnp.int32, (C, 2), 1)
    v = jnp.where(col == 0, avg, mx)                                      # (C, 2) f32

    h = jnp.dot(w1_ref[...], v, preferred_element_type=jnp.float32) + b1_ref[...]   # (Cr, 2)
    h = jnp.maximum(h, 0.0)                                                          # ReLU
    o2 = jnp.dot(w2_ref[...], h, preferred_element_type=jnp.float32) + b2_ref[...]  # (C, 2)

    # mlp(avg) + mlp(max)  ==  sum of the two output columns.
    weights = jnp.sum(o2, axis=-1, keepdims=True)                         # (C, 1) f32

    # ---- scale: broadcast over the spatial axis, store in native dtype ----
    o_ref[...] = x * weights.astype(x.dtype)


def ca_forward(x, w1, b1, w2, b2):
    """x: (N, C, H, W) (NCHW, same as the PyTorch module).

    w1: (Cr, C), b1: (Cr, 1), w2: (C, Cr), b2: (C, 1)  — the 1x1-conv params.
    """
    N, C, H, W = x.shape
    HW = H * W
    Cr = w1.shape[0]

    # Lane-dense last dim: pad HW up to a multiple of 128.
    HWp = ((HW + 127) // 128) * 128
    padded = HWp != HW

    xf = x.reshape(N, C, HW)
    if padded:
        xf = jnp.pad(xf, ((0, 0), (0, 0), (0, HWp - HW)))

    itemsize = jnp.dtype(x.dtype).itemsize
    slab_bytes = C * HWp * itemsize
    weight_bytes = (Cr * C + C * Cr) * 4 + (Cr + C) * 128 * 4  # padded bias tiles
    # Double-buffered input + output slabs + weights + headroom, clamped to a
    # range that is safe on v5e/v6e/v7x.
    vmem_limit = int(min(max(4 * slab_bytes + 2 * weight_bytes + (2 << 20),
                             16 << 20), 64 << 20))

    # Purely HBM-bandwidth bound: read x once, write the result once.
    cost = pl.CostEstimate(
        flops=int(N * (3 * C * HW + 8 * C * Cr)),
        transcendentals=0,
        bytes_accessed=int(2 * N * C * HW * itemsize),
    )

    kernel = functools.partial(_ca_kernel, true_hw=HW, padded=padded)

    out = pl.pallas_call(
        kernel,
        out_shape=jax.ShapeDtypeStruct((N, C, HWp), x.dtype),
        grid=(N,),
        in_specs=[
            pl.BlockSpec((None, C, HWp), lambda b: (b, 0, 0)),  # one batch slab / step
            pl.BlockSpec((Cr, C), lambda b: (0, 0)),            # w1 (resident)
            pl.BlockSpec((Cr, 1), lambda b: (0, 0)),            # b1
            pl.BlockSpec((C, Cr), lambda b: (0, 0)),            # w2
            pl.BlockSpec((C, 1), lambda b: (0, 0)),             # b2
        ],
        out_specs=pl.BlockSpec((None, C, HWp), lambda b: (b, 0, 0)),
        compiler_params=pltpu.CompilerParams(
            dimension_semantics=("parallel",),
            vmem_limit_bytes=vmem_limit,
        ),
        cost_estimate=cost,
    )(xf, w1, b1, w2, b2)

    if padded:
        out = out[:, :, :HW]
    return out.reshape(N, C, H, W)


def ca_reference(x, w1, b1, w2, b2):
    """Pure-JAX reference mirroring the PyTorch forward."""
    avg = jnp.mean(x, axis=(2, 3), keepdims=True)  # (N,C,1,1)
    mx = jnp.max(x, axis=(2, 3), keepdims=True)    # (N,C,1,1)

    def mlp(v):  # v: (N,C,1,1)
        v = v[..., 0, 0]                                        # (N,C)
        h = jnp.maximum(v @ w1.T + b1[:, 0], 0.0)               # (N,Cr)
        o = h @ w2.T + b2[:, 0]                                 # (N,C)
        return o[:, :, None, None]

    weights = mlp(avg) + mlp(mx)
    return x * weights


if __name__ == "__main__":
    # Small shapes consistent with the module: ratio=4 so hidden = C // 4.
    N, C, H, W = 2, 32, 16, 16
    ratio = 4
    Cr = C // ratio

    key = jax.random.PRNGKey(0)
    kx, k1, kb1, k2, kb2 = jax.random.split(key, 5)

    x = jax.random.normal(kx, (N, C, H, W), dtype=jnp.float32)
    # Synthetic 1x1-conv params (shapes from Conv2d(C, Cr, 1) / Conv2d(Cr, C, 1)).
    w1 = jax.random.normal(k1, (Cr, C), dtype=jnp.float32) * 0.1
    b1 = jax.random.normal(kb1, (Cr, 1), dtype=jnp.float32) * 0.1
    w2 = jax.random.normal(k2, (C, Cr), dtype=jnp.float32) * 0.1
    b2 = jax.random.normal(kb2, (C, 1), dtype=jnp.float32) * 0.1

    out = ca_forward(x, w1, b1, w2, b2)
    out = jax.block_until_ready(out)

    ref = ca_reference(x, w1, b1, w2, b2)
    assert out.shape == (N, C, H, W)
    assert jnp.allclose(out, ref, atol=1e-4, rtol=1e-4), "mismatch vs reference"

    print("KERNEL_OK")
</pallas_src>

<mosaic_0001>
module attributes {stable_mosaic.version = 11 : i64} {
  func.func @_ca_kernel(%arg0: i32, %arg1: memref<1x32x256xf32, #tpu.memory_space<vmem>>, %arg2: memref<8x32xf32, #tpu.memory_space<vmem>>, %arg3: memref<8x1xf32, #tpu.memory_space<vmem>>, %arg4: memref<32x8xf32, #tpu.memory_space<vmem>>, %arg5: memref<32x1xf32, #tpu.memory_space<vmem>>, %arg6: memref<1x32x256xf32, #tpu.memory_space<vmem>>) attributes {dimension_semantics = [#tpu.dimension_semantics<parallel>], iteration_bounds = array<i64: 2>, scalar_prefetch = 0 : i64, scratch_operands = 0 : i64, tpu.core_type = #tpu.core_type<tc>, window_params = [{transform_indices = @transform_0, window_bounds = array<i64: 1, 32, 256>}, {pipeline_mode = #tpu.pipeline_mode<synchronous>, transform_indices = @transform_1, window_bounds = array<i64: 8, 32>}, {pipeline_mode = #tpu.pipeline_mode<synchronous>, transform_indices = @transform_2, window_bounds = array<i64: 8, 1>}, {pipeline_mode = #tpu.pipeline_mode<synchronous>, transform_indices = @transform_3, window_bounds = array<i64: 32, 8>}, {pipeline_mode = #tpu.pipeline_mode<synchronous>, transform_indices = @transform_4, window_bounds = array<i64: 32, 1>}, {transform_indices = @transform_5, window_bounds = array<i64: 1, 32, 256>}]} {
    %c0 = arith.constant 0 : index
    %c0_0 = arith.constant 0 : index
    %c0_1 = arith.constant 0 : index
    %0 = vector.load %arg1[%c0, %c0_0, %c0_1] : memref<1x32x256xf32, #tpu.memory_space<vmem>>, vector<1x32x256xf32>
    %1 = vector.shape_cast %0 : vector<1x32x256xf32> to vector<32x256xf32>
    %cst = arith.constant dense<0.000000e+00> : vector<32xf32>
    %2 = vector.multi_reduction <add>, %1, %cst [1] : vector<32x256xf32> to vector<32xf32>
    %3 = vector.shape_cast %2 : vector<32xf32> to vector<32x1xf32>
    %cst_2 = arith.constant 3.906250e-03 : f32
    %4 = vector.broadcast %cst_2 : f32 to vector<32x1xf32>
    %5 = arith.mulf %3, %4 : vector<32x1xf32>
    %cst_3 = arith.constant dense<0xFF800000> : vector<32xf32>
    %6 = vector.multi_reduction <maximumf>, %1, %cst_3 [1] : vector<32x256xf32> to vector<32xf32>
    %7 = vector.shape_cast %6 : vector<32xf32> to vector<32x1xf32>
    %8 = tpu.iota {dimensions = array<i32: 1>} : vector<32x2xi32>
    %c0_i32 = arith.constant 0 : i32
    %9 = vector.broadcast %c0_i32 : i32 to vector<32x2xi32>
    %10 = arith.cmpi eq, %8, %9 : vector<32x2xi32>
    %11 = vector.shape_cast %5 : vector<32x1xf32> to vector<32x1xf32>
    %12 = vector.broadcast %11 : vector<32x1xf32> to vector<32x2xf32>
    %13 = vector.shape_cast %7 : vector<32x1xf32> to vector<32x1xf32>
    %14 = vector.broadcast %13 : vector<32x1xf32> to vector<32x2xf32>
    %15 = arith.select %10, %12, %14 : vector<32x2xi1>, vector<32x2xf32>
    %c0_4 = arith.constant 0 : index
    %c0_5 = arith.constant 0 : index
    %16 = vector.load %arg2[%c0_4, %c0_5] : memref<8x32xf32, #tpu.memory_space<vmem>>, vector<8x32xf32>
    %cst_6 = arith.constant dense<0.000000e+00> : vector<8x2xf32>
    %17 = tpu.matmul %16, %15, %cst_6 {dimension_numbers = #tpu.dot_dimension_numbers<[1], [0], [0], [1], [0, 0, 1, 1], [], []>} : vector<8x32xf32>, vector<32x2xf32>, vector<8x2xf32> -> vector<8x2xf32>
    %c0_7 = arith.constant 0 : index
    %c0_8 = arith.constant 0 : index
    %18 = vector.load %arg3[%c0_7, %c0_8] : memref<8x1xf32, #tpu.memory_space<vmem>>, vector<8x1xf32>
    %19 = vector.broadcast %18 : vector<8x1xf32> to vector<8x2xf32>
    %20 = arith.addf %17, %19 : vector<8x2xf32>
    %cst_9 = arith.constant 0.000000e+00 : f32
    %21 = vector.broadcast %cst_9 : f32 to vector<8x2xf32>
    %22 = arith.maximumf %20, %21 : vector<8x2xf32>
    %c0_10 = arith.constant 0 : index
    %c0_11 = arith.constant 0 : index
    %23 = vector.load %arg4[%c0_10, %c0_11] : memref<32x8xf32, #tpu.memory_space<vmem>>, vector<32x8xf32>
    %cst_12 = arith.constant dense<0.000000e+00> : vector<32x2xf32>
    %24 = tpu.matmul %23, %22, %cst_12 {dimension_numbers = #tpu.dot_dimension_numbers<[1], [0], [0], [1], [0, 0, 1, 1], [], []>} : vector<32x8xf32>, vector<8x2xf32>, vector<32x2xf32> -> vector<32x2xf32>
    %c0_13 = arith.constant 0 : index
    %c0_14 = arith.constant 0 : index
    %25 = vector.load %arg5[%c0_13, %c0_14] : memref<32x1xf32, #tpu.memory_space<vmem>>, vector<32x1xf32>
    %26 = vector.broadcast %25 : vector<32x1xf32> to vector<32x2xf32>
    %27 = arith.addf %24, %26 : vector<32x2xf32>
    %cst_15 = arith.constant dense<0.000000e+00> : vector<32xf32>
    %28 = vector.multi_reduction <add>, %27, %cst_15 [1] : vector<32x2xf32> to vector<32xf32>
    %29 = vector.shape_cast %28 : vector<32xf32> to vector<32x1xf32>
    %30 = vector.broadcast %29 : vector<32x1xf32> to vector<32x256xf32>
    %31 = arith.mulf %1, %30 : vector<32x256xf32>
    %c0_16 = arith.constant 0 : index
    %c0_17 = arith.constant 0 : index
    %c0_18 = arith.constant 0 : index
    %32 = vector.load %arg6[%c0_16, %c0_17, %c0_18] : memref<1x32x256xf32, #tpu.memory_space<vmem>>, vector<1x32x256xf32>
    %33 = vector.shape_cast %32 : vector<1x32x256xf32> to vector<32x256xf32>
    %34 = vector.shape_cast %31 : vector<32x256xf32> to vector<1x32x256xf32>
    tpu.vector_store %arg6[%c0_16, %c0_17, %c0_18], %34 {strides = array<i32>} : memref<1x32x256xf32, #tpu.memory_space<vmem>>, vector<1x32x256xf32>,
    return
  }
  func.func @transform_0(%arg0: i32) -> (i32, i32, i32) {
    %c0_i32 = arith.constant 0 : i32
    %c0_i32_0 = arith.constant 0 : i32
    %c0_i32_1 = arith.constant 0 : i32
    return %arg0, %c0_i32, %c0_i32_0 : i32, i32, i32
  }
  func.func @transform_1(%arg0: i32) -> (i32, i32) {
    %c0_i32 = arith.constant 0 : i32
    %c0_i32_0 = arith.constant 0 : i32
    %c0_i32_1 = arith.constant 0 : i32
    return %c0_i32, %c0_i32_0 : i32, i32
  }
  func.func @transform_2(%arg0: i32) -> (i32, i32) {
    %c0_i32 = arith.constant 0 : i32
    %c0_i32_0 = arith.constant 0 : i32
    %c0_i32_1 = arith.constant 0 : i32
    return %c0_i32, %c0_i32_0 : i32, i32
  }
  func.func @transform_3(%arg0: i32) -> (i32, i32) {
    %c0_i32 = arith.constant 0 : i32
    %c0_i32_0 = arith.constant 0 : i32
    %c0_i32_1 = arith.constant 0 : i32
    return %c0_i32, %c0_i32_0 : i32, i32
  }
  func.func @transform_4(%arg0: i32) -> (i32, i32) {
    %c0_i32 = arith.constant 0 : i32
    %c0_i32_0 = arith.constant 0 : i32
    %c0_i32_1 = arith.constant 0 : i32
    return %c0_i32, %c0_i32_0 : i32, i32
  }
  func.func @transform_5(%arg0: i32) -> (i32, i32, i32) {
    %c0_i32 = arith.constant 0 : i32
    %c0_i32_0 = arith.constant 0 : i32
    %c0_i32_1 = arith.constant 0 : i32
    return %arg0, %c0_i32, %c0_i32_0 : i32, i32, i32
  }
}

</mosaic_0001>

<bundles_post_ra>
// kernel: tpu_custom_call.1
= control target key start
LH: loop header
LB: loop body
LE: loop exit
PB: predicated region body
PF: predicated region fallthrough
CT: control target
= control target key end

     0   :  { %10 = vsyncpa [#allocation3], 0  ;;  %s1088_s0 = inlined_call_operand.hbm [shape: f32[2,32,256], index: 0, kind: input, shape index: {}]   ;;  %s1089_s1 = inlined_call_operand.vmem [shape: f32[8,32], index: 1, kind: input, shape index: {}]   ;;  %s1090_s2 = inlined_call_operand.vmem [shape: f32[8,1], index: 2, kind: input, shape index: {}]   ;;  %s1091_s3 = inlined_call_operand.vmem [shape: f32[32,8], index: 3, kind: input, shape index: {}]   ;;  %s1092_s4 = inlined_call_operand.vmem [shape: f32[32,1], index: 4, kind: input, shape index: {}]   ;;  %s1093_s5 = inlined_call_operand.hbm [shape: f32[2,32,256], index: 5, kind: output, shape index: {}]  }
   0x1   :  { %12 = vsyncpa [#allocation3 + $0x1], 0 }
   0x2   :  { %13 = vsyncpa [#allocation4], 0 }
   0x3   :  { %15 = vsyncpa [#allocation4 + $0x1], 0  ;;  %s848_s18 = smov 0   ;;  %s850_s19 = smov 0  }
   0x4   :  { %s852_s20 = smov 0   ;;  %s854_s21 = smov 0  }
   0x5 LB: > { %s869_s22 = sadd.s32 4294967295, %s807_s21   ;;  %s610_s23 = sadd.s32 4294967294, %s807_s21   ;;  %s807_s21 = sphi %s854_s21, %s1108_s21   ;;  %s803_s20 = sphi %s852_s20, %s1107_s20   ;;  %s799_s19 = sphi %s850_s19, %s1106_s19   ;;  %s795_s18 = sphi %s848_s18, %s1105_s18  }
   0x6   : > { %s873_s24 = sadd.s32 1, %s807_s21   ;;  %s28_s25 = sadd.s32 1, %s803_s20 }
   0x7   : > { %s25_s26 = ssub.s32 %s807_s21, %s873_s24  ;;  %p35_p0 = scmp.ne.s32.totalorder %s803_s20, %s799_s19 }
   0x8   : > { %p26_p1 = scmp.eq.s32.totalorder %s25_s26, 0  ;;  %p36_p2 = scmp.eq.s32.totalorder %s807_s21, 0 }
   0x9   : > { %p41_p3 = scmp.ne.s32.totalorder %s799_s19, %s795_s18  ;;  %p42_p4 = scmp.eq.s32.totalorder %s869_s22, 0 }
   0xa   : > { %s885_s27 = scalar_select %p26_p1, %s803_s20, %s28_s25  }
   0xb   : > { %p887_p5 = por %p36_p2, %p35_p0  ;;  %p891_p6 = por %p42_p4, %p41_p3 }
   0xc   : > { %p149_p7 = scmp.eq.s32.totalorder %s869_s22, 1  ;;  %p155_p8 = scmp.eq.s32.totalorder %s610_s23, 1 }
   0xd   : > { %s1097_s29 = scalar_select %p891_p6, 1, 0 }
   0xe   : > { %p672_p10 = scmp.lt.s32.totalorder %s807_s21, 2  ;;  %p898_p11 = por %p149_p7, %p35_p0 }
   0xf   : > { %p902_p12 = por %p155_p8, %p41_p3  ;;  %s187_s7 = sand.u32 1, %s803_s20  }
  0x10   : > { %s1098_s30 = scalar_select %p898_p11, 1, 0 }
  0x11   : > { %s1099_s6 = scalar_select %p902_p12, 1, 0 }
  0x12   : > { %s629_s8 = sshll.u32 %s807_s21, 10  ;;  %s613_s9 = sshll.u32 %s187_s7, 6 }
  0x13   : > { %s911_s12 = scalar_lea.hbm %s1088_s0, %s629_s8  ;;  %s191_s13 = scalar_lea.vmem [#allocation2], %s613_s9 }
  0x14   : > { %s198_s14 = sshll.u32 %s191_s13, 4  ;;  %p915_p13 = pnand %p672_p10, %p887_p5  ;;  %s919_s14 = int_to_ptr.vmem [resolvable:$true] %s198_s14 }
  0x15   : > { %s921_s16 = scalar_lea.sflag [#allocation3], %s187_s7  ;;  %s715_s17 = scalar_lea.hbm %s911_s12, 1024 }
  0x16   : > { %p716_p0 = scmp.ne.s32.totalorder %s911_s12, %s715_s17  ;;  %p717_p1 = pneg %p915_p13 }
  0x17   : > { %s720_s26 = scalar_lea.hbm %s1088_s0, 2048  ;;  %p721_p4 = scmp.lt.s32.totalorder %s911_s12, %s1088_s0 }
  0x18   : > { %p718_p2 = pnand %p717_p1, %p716_p0  ;;  %p722_p5 = scmp.lt.s32.totalorder %s720_s26, %s715_s17 }
  0x1a   : > { %p719_p3 = pneg %p718_p2  ;;  %p723_p7 = por %p722_p5, %p721_p4 }
  0x1c   : > { %p724_p8 = pnand %p723_p7, %p719_p3 }
  0x1e   : > { %727 = shalt.err (!%p724_p8)
}
  0x1f   : > { %s728_s7 = scalar_lea.vmem %s919_s14, 1024  ;;  %s809_s9 = smov [#allocation2]  }
  0x20   : > { %p729_p10 = scmp.ne.s32.totalorder %s919_s14, %s728_s7  ;;  %s733_s10 = sshll.u32 %s809_s9, 4  ;;  %s734_s10 = int_to_ptr.vmem [resolvable:$false] %s733_s10 }
  0x21   : > { %s735_s11 = scalar_lea.vmem %s734_s10, 2048  ;;  %p736_p2 = scmp.lt.s32.totalorder %s919_s14, %s734_s10 }
  0x22   : > { %p731_p9 = pnand %p729_p10, %p717_p1  ;;  %p737_p12 = scmp.lt.s32.totalorder %s735_s11, %s728_s7 }
  0x24   : > { %p732_p0 = pneg %p731_p9  ;;  %p738_p11 = por %p737_p12, %p736_p2 }
  0x26   : > { %p739_p6 = pnand %p738_p11, %p732_p0 }
  0x28   : > { %742 = shalt.err (!%p739_p6)
}
  0x29   : > { %s810_s13 = smov 256   ;;  %s811_s17 = smov 16  }
  0x2a   : > { %667 = dma.hbm_to_vmem [thread:$0]  (!%p915_p13), %s911_s12, 1024, %s919_s14, %s921_s16, %s810_s13, %s810_s13, %s811_s17  }
  0x2b   : > { %p616_p9 = scmp.ge.s32.totalorder %s807_s21, 1  ;;  %p206_p1 = scmp.lt.s32.totalorder %s807_s21, 3 }
  0x2d   : > { %p207_p3 = pnand %p616_p9, %p206_p1 }
  0x2e   : > { %s945_s23 = sand.u32 (!%p207_p3), 1, %s799_s19   ;;  %p1101_p6 = scmp.ne.s32.totalorder (!%p207_p3), %s1097_s29, 0 }
  0x2f   : > { %210 = sbr.rel (%p207_p3) target bundleno = 769 (0x301), region = 40  ;;  %s617_s25 = sshll.u32 (!%p207_p3), %s945_s23, 6 }
  0x30   : > { %s213_s26 = scalar_lea.sflag (!%p207_p3), [#allocation3], %s945_s23  ;;  %s216_s28 = scalar_lea.vmem (!%p207_p3), [#allocation2], %s617_s25 }
  0x34   : > { %786 = dma.done.wait (%p1101_p6), %s213_s26, 1024  }
  0x35   : > { %788 = vsyncadd (%p1101_p6), %s213_s26, 4294966272  ;;  %v955_v0 = vld [vmem:[%s216_s28 + $0x30] sm:$0xff]  ;;  %v957_v1 = vld [vmem:[%s216_s28 + $0x38] sm:$0xff]  ;;  %v812_v16 = vmov 0.0   ;;  %vm813_vm0 = vmmov 0   ;;  %v814_v17 = vmov 0   ;;  %v279_v19 = vlaneseq }
  0x36   : > { %v959_v2 = vld [vmem:[%s216_s28 + $0x20] sm:$0xff]  ;;  %v276_v3 = vmax.f32 %v955_v0, %v957_v1  ;;  %v260_v4 = vadd.f32 %v957_v1, %v955_v0  ;;  %v965_v5 = vld [vmem:[%s216_s28 + $0x28] sm:$0xff]  ;;  %v967_v6 = vld [vmem:[%s216_s28 + $0x10] sm:$0xff]  ;;  %641 = vmatprep.subr.mxu0 %v812_v16  ;;  %649 = vmatprep.mubr.msk.f32.mxu0 %vm813_vm0, %v812_v16  ;;  %vm293_vm2 = vcmask 261120   ;;  %vm396_vm3 = vcmask 64512   ;;  %s242_s7 = scalar_lea.vmem [#allocation5], %s617_s25 }
  0x37   : > { %v969_v7 = vld [vmem:[%s216_s28 + $0x18] sm:$0xff]  ;;  %v257_v8 = vadd.f32 %v965_v5, %v959_v2  ;;  %v975_v10 = vld [vmem:[%s216_s28] sm:$0xff]  ;;  %v977_v11 = vld [vmem:[%s216_s28 + $0x8] sm:$0xff]  ;;  %v273_v12 = vmax.f32 %v959_v2, %v965_v5  ;;  %713 = vset.pattern.permute.xlu0 %v814_v17  ;;  %714 = vset.pattern.permute.xlu1 %v814_v17  ;;  %v280_v20 = vand.u32 127, %v279_v19  ;;  %vm494_vm4 = vcmask 15360   ;;  %s537_s9 = sshll.u32 %s242_s7, 4  ;;  %s1038_s9 = int_to_ptr.vmem [resolvable:$true] %s537_s9 }
  0x38   : > { %277 = vmax.xlane.f32.xlu1 %v276_v3  ;;  %261 = vadd.xlane.f32.xlu0 %v260_v4  ;;  %v254_v9 = vadd.f32 %v969_v7, %v967_v6  ;;  %v251_v13 = vadd.f32 %v977_v11, %v975_v10  ;;  %v270_v14 = vmax.f32 %v967_v6, %v969_v7  ;;  %v287_v18 = vld [vmem:[%s1090_s2] sm:$0xff]  ;;  %v373_v40 = vld [vmem:[%s1092_s4 + $0x8] sm:$0xff]  ;;  %v374_v41 = vld [vmem:[%s1092_s4 + $0x10] sm:$0xff]  ;;  %s630_s10 = sshll.u32 %s869_s22, 10  ;;  %s524_s22 = scalar_lea.sflag [#allocation4], %s945_s23 }
  0x39   : > { %v267_v15 = vmax.f32 %v975_v10, %v977_v11  ;;  %vm281_vm1 = vcmp.eq.s32.totalorder %v280_v20, 0  ;;  %v286_v36 = vld [vmem:[%s1089_s1] sm:$0xff]  ;;  %v375_v42 = vld [vmem:[%s1092_s4 + $0x18] sm:$0xff]  ;;  %v369_v48 = vld [vmem:[%s1091_s3 + $0x8] sm:$0xff]  ;;  %s1043_s13 = scalar_lea.hbm %s1093_s5, %s630_s10  ;;  %s743_s17 = scalar_lea.vmem %s1038_s9, 1024 }
  0x3a   : > { %v368_v38 = vld [vmem:[%s1091_s3] sm:$0xff]  ;;  %v370_v49 = vld [vmem:[%s1091_s3 + $0x10] sm:$0xff]  ;;  %v371_v50 = vld [vmem:[%s1091_s3 + $0x18] sm:$0xff]  ;;  %p744_p11 = scmp.ne.s32.totalorder %s1038_s9, %s743_s17  ;;  %p1102_p12 = scmp.ne.s32.totalorder %s1098_s30, 0 }
  0x3b   : > { %654 = vmatprep.mubr.msk.f32.mxu1 %vm396_vm3, %v368_v38  ;;  %v372_v39 = vld [vmem:[%s1092_s4] sm:$0xff]  ;;  %s815_s26 = smov [#allocation5]  }
  0x3c   : > { %258 = vadd.xlane.f32.xlu0 %v257_v8  ;;  %255 = vadd.xlane.f32.xlu1 %v254_v9  ;;  %p745_p13 = pnand %p744_p11, %p1102_p12  ;;  %s747_s28 = sshll.u32 %s815_s26, 4  ;;  %s748_s28 = int_to_ptr.vmem [resolvable:$false] %s747_s28 }
  0x3d   : > { %s749_s29 = scalar_lea.vmem %s748_s28, 2048  ;;  %p750_p5 = scmp.lt.s32.totalorder %s1038_s9, %s748_s28 }
  0x3e   : > { %p746_p4 = pneg %p745_p13  ;;  %p751_p7 = scmp.lt.s32.totalorder %s749_s29, %s743_s17 }
  0x40   : > { %274 = vmax.xlane.f32.xlu0 %v273_v12  ;;  %252 = vadd.xlane.f32.xlu1 %v251_v13  ;;  %p752_p8 = por %p751_p7, %p750_p5 }
  0x42   : > { %p753_p10 = pnand %p752_p8, %p746_p4 }
  0x44   : > { %271 = vmax.xlane.f32.xlu0 %v270_v14  ;;  %268 = vmax.xlane.f32.xlu1 %v267_v15 }
  0x55   : > { %378 = vperm.xlu1 %714, %v372_v39  }
  0x59   : > { %383 = vperm.xlu1 %714, %v373_v40  }
  0x5a   : > { %290 = vperm.xlu0 %713, %v287_v18  }
  0x5d   : > { %388 = vperm.xlu1 %714, %v374_v41  }
  0x61   : > { %393 = vperm.xlu1 %714, %v375_v42  }
  0xc1   : > { %v278_v21 = vpop.xlane.xlu1 %277  ;;  %v262_v22 = vpop.xlane.xlu0 %261 }
  0xc2   : > { %v266_v23 = vmul.f32 0.00390625, %v262_v22 }
  0xc4   : > { %v285_v24 = vsel %vm281_vm1, %v266_v23, %v278_v21 }
  0xc5   : > { %642 = vmatpush3.msra.mxu0 %v285_v24  ;;  %v259_v25 = vpop.xlane.xlu0 %258  ;;  %v256_v26 = vpop.xlane.xlu1 %255 }
  0xc6   : > { %643 = vmatprep.subr.mxu0 %v812_v16  ;;  %v265_v27 = vmul.f32 0.00390625, %v259_v25  ;;  %v264_v31 = vmul.f32 0.00390625, %v256_v26 }
  0xc9   : > { %v275_v28 = vpop.xlane.xlu0 %274  ;;  %v253_v29 = vpop.xlane.xlu1 %252 }
  0xca   : > { %v284_v30 = vsel %vm281_vm1, %v265_v27, %v275_v28  ;;  %v263_v32 = vmul.f32 0.00390625, %v253_v29 }
  0xcb   : > { %644 = vmatpush3.msra.mxu0 %v284_v30 }
  0xcc   : > { %645 = vmatprep.subr.mxu0 %v812_v16 }
  0xcd   : > { %v272_v33 = vpop.xlane.xlu0 %271  ;;  %v269_v34 = vpop.xlane.xlu1 %268 }
  0xce   : > { %v283_v35 = vsel %vm281_vm1, %v264_v31, %v272_v33  ;;  %v282_v37 = vsel %vm281_vm1, %v263_v32, %v269_v34 }
  0xcf   : > { %646 = vmatpush3.msra.mxu0 %v283_v35 }
  0xd0   : > { %647 = vmatprep.subr.mxu0 %v812_v16 }
  0xd1   : > { %648 = vmatpush3.msra.mxu0 %v282_v37  ;;  %v379_v51 = vpop.permute.xlu1 %378 }
  0xd2   : > { %650 = vmatmul.mubr.msk.f32.vlgmr.msra.gmra.mxu0 %vm293_vm2, %v286_v36 }
  0xd5   : > { %v291_v43 = vpop.permute.xlu0 %290  ;;  %v384_v52 = vpop.permute.xlu1 %383 }
  0xd9   : > { %v389_v55 = vpop.permute.xlu1 %388 }
  0xdd   : > { %v394_v63 = vpop.permute.xlu1 %393 }
 0x192   : > { %v363_v44 = vpop.f32.mrf.mxu0 }
 0x193   : > { %v364_v45 = vadd.f32 %v363_v44, %v291_v43 }
 0x194   : > { %v651_v46 = vpop.f32.mrf.mxu0 }
 0x195   : > { %v367_v47 = vmax.f32 %v364_v45, 0.0 }
 0x197   : > { %652 = vmatprep.subr.mxu1 %v367_v47 }
 0x198   : > { %653 = vmatpush3.msra.mxu1 %v367_v47 }
 0x199   : > { %655 = vmatmul.mubr.msk.f32.vlgmr.msra.gmra.mxu1 %vm396_vm3, %v369_v48 }
 0x19a   : > { %657 = vmatprep.mubr.msk.f32.mxu1 %vm396_vm3, %v370_v49 }
 0x19d   : > { %658 = vmatmul.mubr.msk.f32.gmra.mxu1 %vm396_vm3, %v371_v50 }
 0x259   : > { %v656_v53 = vpop.f32.mrf.mxu1 }
 0x25a   : > { %v481_v54 = vadd.f32 %v656_v53, %v384_v52 }
 0x25b   : > { %v475_v56 = vpop.f32.mrf.mxu1 }
 0x25c   : > { %v476_v57 = vadd.f32 %v475_v56, %v379_v51  ;;  %v498_v58 = vsel %vm494_vm4, %v481_v54, 0.0 }
 0x25d   : > { %v659_v59 = vpop.f32.mrf.mxu1  ;;  %499 = vadd.xlane.f32.xlu0 %v498_v58 }
 0x25e   : > { %v495_v60 = vsel %vm494_vm4, %v476_v57, 0.0  ;;  %v491_v3 = vadd.f32 %v659_v59, %v394_v63 }
 0x25f   : > { %v485_v61 = vpop.f32.mrf.mxu1  ;;  %496 = vadd.xlane.f32.xlu1 %v495_v60 }
 0x260   : > { %v486_v62 = vadd.f32 %v485_v61, %v389_v55  ;;  %v504_v8 = vsel %vm494_vm4, %v491_v3, 0.0 }
 0x262   : > { %v501_v4 = vsel %vm494_vm4, %v486_v62, 0.0 }
 0x263   : > { %502 = vadd.xlane.f32.xlu1 %v501_v4 }
 0x267   : > { %505 = vadd.xlane.f32.xlu1 %v504_v8 }
 0x2e6   : > { %v500_v9 = vpop.xlane.xlu0 %499 }
 0x2e7   : > { %v509_v12 = vmul.f32 %v500_v9, %v967_v6  ;;  %v510_v13 = vmul.f32 %v500_v9, %v969_v7 }
 0x2e8   : > { %v497_v14 = vpop.xlane.xlu1 %496 }
 0x2e9   : > { %517 = vst [vmem:[%s242_s7 + $0x10] sm:$0xff] %v509_v12  ;;  %518 = vst [vmem:[%s242_s7 + $0x18] sm:$0xff] %v510_v13  ;;  %v507_v15 = vmul.f32 %v497_v14, %v975_v10  ;;  %v508_v16 = vmul.f32 %v497_v14, %v977_v11 }
 0x2eb   : > { %515 = vst [vmem:[%s242_s7] sm:$0xff] %v507_v15  ;;  %516 = vst [vmem:[%s242_s7 + $0x8] sm:$0xff] %v508_v16 }
 0x2ec   : > { %v503_v17 = vpop.xlane.xlu1 %502 }
 0x2ed   : > { %v511_v18 = vmul.f32 %v503_v17, %v959_v2  ;;  %v512_v6 = vmul.f32 %v503_v17, %v965_v5 }
 0x2ef   : > { %519 = vst [vmem:[%s242_s7 + $0x20] sm:$0xff] %v511_v18  ;;  %520 = vst [vmem:[%s242_s7 + $0x28] sm:$0xff] %v512_v6 }
 0x2f0   : > { %v506_v7 = vpop.xlane.xlu1 %505 }
 0x2f1   : > { %v513_v10 = vmul.f32 %v506_v7, %v955_v0  ;;  %v514_v2 = vmul.f32 %v506_v7, %v957_v1 }
 0x2f3   : > { %521 = vst [vmem:[%s242_s7 + $0x30] sm:$0xff] %v513_v10  ;;  %522 = vst [vmem:[%s242_s7 + $0x38] sm:$0xff] %v514_v2 }
 0x2f4   : > { %756 = shalt.err (!%p753_p10)
}
 0x2f5   : > { %s757_s12 = scalar_lea.hbm %s1043_s13, 1024  ;;  %s761_s16 = scalar_lea.hbm %s1093_s5, 2048 }
 0x2f6   : > { %p758_p0 = scmp.ne.s32.totalorder %s1043_s13, %s757_s12  ;;  %p762_p1 = scmp.lt.s32.totalorder %s1043_s13, %s1093_s5 }
 0x2f7   : > { %p763_p3 = scmp.lt.s32.totalorder %s761_s16, %s757_s12 }
 0x2f8   : > { %p759_p2 = pnand %p758_p0, %p1102_p12 }
 0x2f9   : > { %p764_p6 = por %p763_p3, %p762_p1 }
 0x2fa   : > { %p760_p9 = pneg %p759_p2 }
 0x2fc   : > { %p765_p11 = pnand %p764_p6, %p760_p9 }
 0x2fe   : > { %768 = shalt.err (!%p765_p11)
}
 0x2ff   : > { %s816_s10 = smov 256   ;;  %s817_s25 = smov 16  }
 0x300   : > { %662 = dma.vmem_to_hbm [thread:$0]  (%p1102_p12), %s1038_s9, 1024, %s1043_s13, %s524_s22, %s816_s10, %s816_s10, %s817_s25  }
 0x301 PF: > { %s552_s11 = sand.u32 1, %s795_s18   ;;  %p1103_p13 = scmp.ne.s32.totalorder %s1099_s6, 0 }
 0x302   : > { %p1104_p4 = scmp.ge.s32.totalorder %s807_s21, 2  ;;  %s553_s17 = scalar_lea.sflag [#allocation4], %s552_s11 }
 0x304   : > { %p669_p5 = pnand %p1104_p4, %p1103_p13 }
 0x306   : > { %p670_p7 = pneg %p669_p5 }
 0x308   : > { %790 = dma.done.wait (%p670_p7), %s553_s17, 1024  }
 0x309   : > { %792 = vsyncadd (%p670_p7), %s553_s17, 4294966272  ;;  %p18_p8 = scmp.ge.s32.totalorder %s873_s24, 4   ;;  %s1105_s18 = smov %s799_s19 }
 0x30a   : > { %s1106_s19 = smov %s803_s20  ;;  %s1107_s20 = smov %s885_s27 }
 0x30b   : > { %s1108_s21 = smov %s873_s24  ;;  %20 = sbr.rel (!%p18_p8) target bundleno = 5 (0x5), region = 85 }
 0x310   :  { %558 = vsyncpa [#allocation3], 1 }
 0x311   :  { %560 = vsyncpa [#allocation3 + $0x1], 1 }
 0x312   :  { %561 = vsyncpa [#allocation4], 1 }
 0x313   :  { %563 = vsyncpa [#allocation4 + $0x1], 1 }

</bundles_post_ra>
